<compile_context>
chip_gen: v7x
topology: tpu7x:2x2x1
jax: 0.10.0
libtpu: 0.0.40
codegen_flags: <defaults>
</compile_context>

<pallas_src>
import jax
import jax.numpy as jnp
from jax.experimental import pallas as pl
from jax.experimental.pallas import tpu as pltpu


# ----------------------------- kernel ---------------------------------------
def _make_affine_kernel(tile_rows):
    """Collapsed SequentialFlow chain: one FMA per element.

    x_ref:     (tile_rows, tile_hw)  input rows (row = one (sample, channel))
    scale_ref: (rows_p, 1)           resident per-row effective scale (f32)
    bias_ref:  (rows_p, 1)           resident per-row effective bias  (f32)
    z_ref:     (tile_rows, tile_hw)  output rows
    """

    def kernel(x_ref, scale_ref, bias_ref, z_ref):
        r0 = pl.multiple_of(pl.program_id(0) * tile_rows, tile_rows)
        s = scale_ref[pl.ds(r0, tile_rows), :]
        b = bias_ref[pl.ds(r0, tile_rows), :]
        # f32 params even for bf16 x (mixed-precision VPU mul/add is full rate
        # and x/z traffic is unchanged); cast only the result.
        z_ref[...] = (x_ref[...] * s + b).astype(z_ref.dtype)

    return kernel


# --------------------------- tiling helpers ----------------------------------
def _tpu_vmem_bytes():
    """Physical VMEM per core; conservative 64 MiB (v7x-class) if unknown."""
    try:
        info = pltpu.get_tpu_info()
        for attr in ("vmem_capacity_bytes", "vmem_bytes", "vmem_size_bytes"):
            v = getattr(info, attr, None)
            if v:
                return int(v)
    except Exception:
        pass
    return 64 << 20


def _round_up(x, m):
    return ((x + m - 1) // m) * m


def _pick_lane_tile(hw_p, max_lane_tile=8192):
    """Largest multiple-of-128 divisor of hw_p that is <= max_lane_tile."""
    if hw_p <= max_lane_tile:
        return hw_p
    t = max_lane_tile - (max_lane_tile % 128)
    while t >= 128:
        if hw_p % t == 0:
            return t
        t -= 128
    return 128  # hw_p is always a multiple of 128 after padding


def _pick_row_tile(rows_p, tile_hw, itemsize, byte_target, sub_mult):
    """Largest sub_mult-multiple divisor of rows_p within the byte budget."""
    target = max(sub_mult, byte_target // max(tile_hw * itemsize, 1))
    t = min(rows_p, int(target))
    t -= t % sub_mult
    t = max(t, sub_mult)
    while rows_p % t != 0:
        t -= sub_mult
    return t


# --------------------------- chain collapse ----------------------------------
def _collapse_chain(logs, bias, hw):
    """Fold L per-channel affine layers into one scale/bias + logp scalar.

    y = x * exp(sum_l s_l) + sum_l b_l * exp(sum_{m>l} s_m)
    dlogp = -HW * sum_{l,c} s_{l,c}
    Valid only because the log-det is data-independent (ActNorm-style layers).
    """
    logs32 = logs.astype(jnp.float32)
    bias32 = bias.astype(jnp.float32)
    scale_eff = jnp.exp(jnp.sum(logs32, axis=0))                 # (C,)
    suffix_incl = jnp.cumsum(logs32[::-1], axis=0)[::-1]         # sum_{m>=l}
    suffix_excl = suffix_incl - logs32                           # sum_{m>l}
    bias_eff = jnp.sum(bias32 * jnp.exp(suffix_excl), axis=0)    # (C,)
    dlogp = -float(hw) * jnp.sum(logs32)                         # scalar
    return scale_eff, bias_eff, dlogp


# ------------------------------ wrapper --------------------------------------
def sequential_flow_forward(x, logs, bias, logpx=None):
    """JAX wrapper mirroring SequentialFlow.forward(x, logpx=None).

    x:    (N, C, H, W)   logs, bias: (L, C)   logpx: (N,) or None
    """
    N, C, H, W = x.shape
    HW = H * W
    rows = N * C

    scale_eff, bias_eff, dlogp = _collapse_chain(logs, bias, HW)

    itemsize = jnp.dtype(x.dtype).itemsize
    sub_mult = max(8, 32 // itemsize)        # 8 f32, 16 bf16, 32 int8/fp8
    rows_p = _round_up(rows, sub_mult)       # sublane-dense rows
    hw_p = _round_up(HW, 128)                # lane-dense columns

    # Per-generation tile/byte budgets.
    phys_vmem = _tpu_vmem_bytes()
    if phys_vmem <= (64 << 20):              # v7x-class: 64 MiB VMEM, ~3.2 TB/s HBM
        tile_byte_target = 8 << 20           # bigger tiles amortize 0.35 us/step
        vmem_cap = 40 << 20                  # leave headroom below physical 64 MiB
    else:                                    # v5e / v6e: 128 MiB VMEM
        tile_byte_target = 4 << 20
        vmem_cap = 96 << 20

    tile_hw = _pick_lane_tile(hw_p)
    tile_rows = _pick_row_tile(rows_p, tile_hw, itemsize, tile_byte_target, sub_mult)

    n_row_tiles = rows_p // tile_rows
    n_lane_tiles = hw_p // tile_hw
    # Give v7x's 2 TensorCores something to shard when a single tile would
    # cover a non-trivial problem.
    if (n_row_tiles * n_lane_tiles < 2
            and rows_p >= 2 * sub_mult
            and rows_p * hw_p * itemsize > (1 << 20)):
        half = max(sub_mult, (rows_p // 2) - ((rows_p // 2) % sub_mult))
        while rows_p % half != 0:
            half -= sub_mult
        tile_rows = half
        n_row_tiles = rows_p // tile_rows

    # Per-row (sample, channel) parameter columns, kept in f32, padded to rows_p.
    scale_rows = jnp.tile(scale_eff, N).astype(jnp.float32)
    bias_rows = jnp.tile(bias_eff, N).astype(jnp.float32)
    if rows_p != rows:
        scale_rows = jnp.pad(scale_rows, (0, rows_p - rows))
        bias_rows = jnp.pad(bias_rows, (0, rows_p - rows))
    scale_rows = scale_rows.reshape(rows_p, 1)
    bias_rows = bias_rows.reshape(rows_p, 1)

    x2 = x.reshape(rows, HW)
    if (rows_p, hw_p) != (rows, HW):
        x2 = jnp.pad(x2, ((0, rows_p - rows), (0, hw_p - HW)))

    # VMEM budget: double-buffered x/z tiles + resident params + headroom,
    # capped per generation (never at physical capacity).
    tile_bytes = tile_rows * tile_hw * itemsize
    param_bytes = 2 * rows_p * 4
    needed = 4 * tile_bytes + 2 * param_bytes + (2 << 20)
    vmem_limit = int(min(max(needed, 16 << 20), vmem_cap))

    grid = (n_row_tiles, n_lane_tiles)

    z2 = pl.pallas_call(
        _make_affine_kernel(tile_rows),
        out_shape=jax.ShapeDtypeStruct((rows_p, hw_p), x.dtype),
        grid=grid,
        in_specs=[
            pl.BlockSpec((tile_rows, tile_hw), lambda i, j: (i, j)),
            # scale/bias: whole column resident, DMA'd once (block index fixed).
            pl.BlockSpec((rows_p, 1), lambda i, j: (0, 0)),
            pl.BlockSpec((rows_p, 1), lambda i, j: (0, 0)),
        ],
        out_specs=pl.BlockSpec((tile_rows, tile_hw), lambda i, j: (i, j)),
        compiler_params=pltpu.CompilerParams(
            dimension_semantics=("parallel", "parallel"),
            vmem_limit_bytes=vmem_limit,
        ),
    )(x2, scale_rows, bias_rows)

    if (rows_p, hw_p) != (rows, HW):
        z2 = z2[:rows, :HW]
    z = z2.reshape(N, C, H, W)

    if logpx is None:
        return z
    # Log-det correction is sample-independent: one scalar add in the wrapper
    # (no dead DMA / masked (N,1) store inside the kernel).
    lp_out = jnp.asarray(logpx, jnp.float32) + dlogp
    return z, lp_out

    # TODO(synk): SequentialFlow.inverse() (reverse iteration over the chain)
    # is not implemented as a kernel; forward semantics only.


# ----------------------------- reference -------------------------------------
def _reference_forward(x, logs, bias, logpx):
    """Pure-JAX per-layer reference of the same chained flow."""
    N, C, H, W = x.shape
    xr = x.astype(jnp.float32)
    lp = jnp.asarray(logpx, jnp.float32)
    for l in range(logs.shape[0]):
        s = logs[l].astype(jnp.float32)
        b = bias[l].astype(jnp.float32)
        xr = xr * jnp.exp(s)[None, :, None, None] + b[None, :, None, None]
        lp = lp - (H * W) * jnp.sum(s)
    return xr, lp


if __name__ == "__main__":
    key = jax.random.PRNGKey(0)
    k_x, k_s, k_b, k_lp, k_x2 = jax.random.split(key, 5)

    # --- case 1: aligned shapes (lane/sublane dense, no padding path) -------
    N, C, H, W = 2, 4, 16, 16
    L = 3
    x = jax.random.normal(k_x, (N, C, H, W), dtype=jnp.float32)
    logs = 0.1 * jax.random.normal(k_s, (L, C), dtype=jnp.float32)
    bias = 0.05 * jax.random.normal(k_b, (L, C), dtype=jnp.float32)
    logpx = jax.random.normal(k_lp, (N,), dtype=jnp.float32)

    z_only = sequential_flow_forward(x, logs, bias, logpx=None)
    jax.block_until_ready(z_only)
    z, lp = sequential_flow_forward(x, logs, bias, logpx=logpx)
    jax.block_until_ready((z, lp))

    z_ref, lp_ref = _reference_forward(x, logs, bias, logpx)
    assert jnp.allclose(z, z_ref, atol=1e-5, rtol=1e-5)
    assert jnp.allclose(lp, lp_ref, atol=1e-4, rtol=1e-5)
    assert jnp.allclose(z_only, z_ref, atol=1e-5, rtol=1e-5)

    # --- case 2: misaligned shapes (exercise row/lane padding path) ---------
    N2, C2, H2, W2 = 2, 3, 14, 14          # rows=6 (not mult of 8), HW=196
    x_m = jax.random.normal(k_x2, (N2, C2, H2, W2), dtype=jnp.float32)
    logs_m = 0.1 * jax.random.normal(k_s, (L, C2), dtype=jnp.float32)
    bias_m = 0.05 * jax.random.normal(k_b, (L, C2), dtype=jnp.float32)
    logpx_m = jax.random.normal(k_lp, (N2,), dtype=jnp.float32)

    z_m, lp_m = sequential_flow_forward(x_m, logs_m, bias_m, logpx=logpx_m)
    jax.block_until_ready((z_m, lp_m))
    z_mref, lp_mref = _reference_forward(x_m, logs_m, bias_m, logpx_m)
    assert jnp.allclose(z_m, z_mref, atol=1e-5, rtol=1e-5)
    assert jnp.allclose(lp_m, lp_mref, atol=1e-4, rtol=1e-5)

    print("KERNEL_OK")
</pallas_src>

<mosaic_0001>
module attributes {stable_mosaic.version = 11 : i64} {
  func.func @kernel(%arg0: i32, %arg1: i32, %arg2: memref<8x256xf32, #tpu.memory_space<vmem>>, %arg3: memref<8x1xf32, #tpu.memory_space<vmem>>, %arg4: memref<8x1xf32, #tpu.memory_space<vmem>>, %arg5: memref<8x256xf32, #tpu.memory_space<vmem>>) attributes {dimension_semantics = [#tpu.dimension_semantics<parallel>, #tpu.dimension_semantics<parallel>], iteration_bounds = array<i64: 1, 1>, scalar_prefetch = 0 : i64, scratch_operands = 0 : i64, tpu.core_type = #tpu.core_type<tc>, window_params = [{transform_indices = @transform_0, window_bounds = array<i64: 8, 256>}, {pipeline_mode = #tpu.pipeline_mode<synchronous>, transform_indices = @transform_1, window_bounds = array<i64: 8, 1>}, {pipeline_mode = #tpu.pipeline_mode<synchronous>, transform_indices = @transform_2, window_bounds = array<i64: 8, 1>}, {transform_indices = @transform_3, window_bounds = array<i64: 8, 256>}]} {
    %c8_i32 = arith.constant 8 : i32
    %0 = arith.muli %arg0, %c8_i32 : i32
    %1 = tpu.assume_multiple %0, 8 : i32
    %2 = arith.index_cast %1 : i32 to index
    %c0 = arith.constant 0 : index
    %3 = vector.load %arg3[%2, %c0] : memref<8x1xf32, #tpu.memory_space<vmem>>, vector<8x1xf32>
    %4 = arith.index_cast %1 : i32 to index
    %c0_0 = arith.constant 0 : index
    %5 = vector.load %arg4[%4, %c0_0] : memref<8x1xf32, #tpu.memory_space<vmem>>, vector<8x1xf32>
    %c0_1 = arith.constant 0 : index
    %c0_2 = arith.constant 0 : index
    %6 = vector.load %arg2[%c0_1, %c0_2] : memref<8x256xf32, #tpu.memory_space<vmem>>, vector<8x256xf32>
    %7 = vector.broadcast %3 : vector<8x1xf32> to vector<8x256xf32>
    %8 = arith.mulf %6, %7 : vector<8x256xf32>
    %9 = vector.broadcast %5 : vector<8x1xf32> to vector<8x256xf32>
    %10 = arith.addf %8, %9 : vector<8x256xf32>
    %c0_3 = arith.constant 0 : index
    %c0_4 = arith.constant 0 : index
    %11 = vector.load %arg5[%c0_3, %c0_4] : memref<8x256xf32, #tpu.memory_space<vmem>>, vector<8x256xf32>
    tpu.vector_store %arg5[%c0_3, %c0_4], %10 {strides = array<i32>} : memref<8x256xf32, #tpu.memory_space<vmem>>, vector<8x256xf32>,
    return
  }
  func.func @transform_0(%arg0: i32, %arg1: i32) -> (i32, i32) {
    %c0_i32 = arith.constant 0 : i32
    return %arg0, %arg1 : i32, i32
  }
  func.func @transform_1(%arg0: i32, %arg1: i32) -> (i32, i32) {
    %c0_i32 = arith.constant 0 : i32
    %c0_i32_0 = arith.constant 0 : i32
    %c0_i32_1 = arith.constant 0 : i32
    return %c0_i32, %c0_i32_0 : i32, i32
  }
  func.func @transform_2(%arg0: i32, %arg1: i32) -> (i32, i32) {
    %c0_i32 = arith.constant 0 : i32
    %c0_i32_0 = arith.constant 0 : i32
    %c0_i32_1 = arith.constant 0 : i32
    return %c0_i32, %c0_i32_0 : i32, i32
  }
  func.func @transform_3(%arg0: i32, %arg1: i32) -> (i32, i32) {
    %c0_i32 = arith.constant 0 : i32
    return %arg0, %arg1 : i32, i32
  }
}

</mosaic_0001>

<bundles_post_ra>
// kernel: tpu_custom_call.1
= control target key start
LH: loop header
LB: loop body
LE: loop exit
PB: predicated region body
PF: predicated region fallthrough
CT: control target
= control target key end

     0   :  { %v79_v1 = vmov 0   ;;  %s125_s0 = inlined_call_operand.vmem [shape: f32[8,256], index: 0, kind: input, shape index: {}]   ;;  %s126_s1 = inlined_call_operand.vmem [shape: f32[8,1], index: 1, kind: input, shape index: {}]   ;;  %s127_s2 = inlined_call_operand.vmem [shape: f32[8,1], index: 2, kind: input, shape index: {}]   ;;  %s128_s3 = inlined_call_operand.hbm [shape: f32[8,256], index: 3, kind: output, shape index: {}]  }
   0x1   :  { %v17_v0 = vld [vmem:[%s126_s1] sm:$0xff]  ;;  %54 = vset.pattern.permute.xlu0 %v79_v1 }
   0x2   :  { %8 = vsyncpa [#allocation3], 0  ;;  %24 = vperm.xlu0 %54, %v17_v0   ;;  %v19_v2 = vld [vmem:[%s127_s2] sm:$0xff]  ;;  %v21_v4 = vld [vmem:[%s125_s0 + $0x8] sm:$0xff]  ;;  %s80_s20 = smov [#allocation2]  }
   0x3   :  { %v20_v3 = vld [vmem:[%s125_s0] sm:$0xff]  ;;  %s44_s1 = sshll.u32 %s80_s20, 4  ;;  %s45_s1 = int_to_ptr.vmem [resolvable:$true] %s44_s1 }
   0x4   :  { %s55_s2 = scalar_lea.vmem %s45_s1, 256  ;;  %p60_p1 = scmp.lt.s32.totalorder %s45_s1, %s45_s1 }
   0x5   :  { %p56_p0 = scmp.ne.s32.totalorder %s45_s1, %s55_s2  ;;  %p61_p2 = scmp.lt.s32.totalorder %s55_s2, %s55_s2 }
   0x6   :  { %31 = vperm.xlu0 %54, %v19_v2  }
   0x7   :  { %p62_p3 = por %p61_p2, %p60_p1 }
   0x9   :  { %p63_p4 = pnand %p62_p3, %p56_p0 }
  0x81   :  { %v25_v5 = vpop.permute.xlu0 %24 }
  0x82   :  { %v27_v6 = vmul.f32 %v25_v5, %v20_v3  ;;  %v28_v7 = vmul.f32 %v25_v5, %v21_v4 }
  0x85   :  { %v32_v8 = vpop.permute.xlu0 %31 }
  0x86   :  { %v34_v9 = vadd.f32 %v32_v8, %v27_v6  ;;  %v35_v10 = vadd.f32 %v32_v8, %v28_v7 }
  0x88   :  { %36 = vst [vmem:[#allocation2] sm:$0xff] %v34_v9  ;;  %37 = vst [vmem:[#allocation2 + $0x8] sm:$0xff] %v35_v10 }
  0x89   :  { %66 = shalt.err (!%p63_p4)
}
  0x8a   :  { %s67_s22 = scalar_lea.hbm %s128_s3, 256 }
  0x8b   :  { %p68_p5 = scmp.ne.s32.totalorder %s128_s3, %s67_s22  ;;  %p71_p6 = scmp.lt.u32.totalorder %s67_s22, %s128_s3 }
  0x8d   :  { %p73_p7 = pnand %p71_p6, %p68_p5 }
  0x8f   :  { %76 = shalt.err (!%p73_p7)
}
  0x90   :  { %47 = dma.vmem_to_hbm [thread:$0]  %s45_s1, 256, %s128_s3, [#allocation3]  }
  0x91   :  { %77 = dma.done.wait [#allocation3], 256  }
  0x92   :  { %78 = vsyncadd [#allocation3], 4294967040 }
  0x93   :  { %51 = vsyncpa [#allocation3], 1 }

</bundles_post_ra>
